<compile_context>
chip_gen: v7x
topology: tpu7x:2x2x1
jax: 0.10.0
libtpu: 0.0.40
codegen_flags: <defaults>
</compile_context>

<pallas_src>
import jax
import jax.numpy as jnp
from jax.experimental import pallas as pl
from jax.experimental.pallas import tpu as pltpu

# ---------------- problem sizes (small, consistent with the module) ----------
NUM_SCAN_SAMPLES = 32                       # laser scan length
STATE_SIZE = NUM_SCAN_SAMPLES + 4           # states = [laser | 4 extra values]
ACTION_SIZE = 2
HIDDEN_SIZE = 32
HALF_HIDDEN = HIDDEN_SIZE // 2

CONV_CHANNELS = 4                           # concrete conv_function
CONV_KERNEL = 5
CONV_LOUT = NUM_SCAN_SAMPLES - CONV_KERNEL + 1   # stride 1, valid conv (28)
CONV_OUT_SIZE = CONV_CHANNELS * CONV_LOUT        # flattened conv features (112)
FC1_IN = CONV_OUT_SIZE + 4                       # conv_out_size + 4 (116)

BATCH = 4
LANES = 128

# input lane layout: [states(0:36) | actions(36:38) | ones(38) | zero pad]
ONES_LANE = STATE_SIZE + ACTION_SIZE        # 38
ONES_COL = 127                              # constant-1 column carried in h, x

# ------------- packed-slab row layout (all sections 8/16-row aligned) --------
R_WTOEP = 0        # (128,128) Toeplitz conv weights; row 38 = conv bias
R_WH    = 128      # (256,128) fused h weights: rows 0:128 act on conv feats,
                   #            rows 128:256 act on the packed input block
R_W2    = 384      # (128,128) fca1; row 127 = fca1 bias, [127,127] = 1.0
R_W3    = 512      # (128,128) fca2; row 127 col 0 = fca2 bias
SLAB_ROWS = 640


# ------------------------------ Pallas kernel --------------------------------
def critic_kernel(inp_ref, slab_ref, out_ref):
    w_toep = slab_ref[R_WTOEP:R_WTOEP + LANES, :]
    w_h    = slab_ref[R_WH:R_WH + 2 * LANES, :]
    w_2    = slab_ref[R_W2:R_W2 + LANES, :]
    w_3    = slab_ref[R_W3:R_W3 + LANES, :]

    # conv_function (Conv1d(1->4,k=5)+ReLU+flatten) as one MXU matmul; the conv
    # bias is folded into the ones-lane row of w_toep, so no broadcast-add.
    conv = jnp.maximum(
        jnp.dot(inp_ref[...], w_toep, preferred_element_type=jnp.float32), 0.0)

    # Fused K=256 h-layer: [conv | inp] @ [w_c ; w_s].  Matches the 256-deep
    # MXU on v6e/v7x.  fc1/fa1 and their biases are all folded in, so
    # h == [xs | xa | 0 ... | 1] with zero cross-lane shuffles.
    hin = jnp.concatenate([conv.astype(jnp.bfloat16), inp_ref[...]], axis=-1)
    h = jnp.maximum(jnp.dot(hin, w_h, preferred_element_type=jnp.float32), 0.0)

    # fca1 (+ bias via ones column), fca2 (+ bias via ones column).
    x = jnp.maximum(
        jnp.dot(h.astype(jnp.bfloat16), w_2,
                preferred_element_type=jnp.float32), 0.0)
    out_ref[...] = jnp.dot(
        x.astype(jnp.bfloat16), w_3,
        preferred_element_type=jnp.float32).astype(out_ref.dtype)


# --------------------------- host-side param packing -------------------------
def pack_slab(params):
    """Pack all Critic parameters (biases folded) into one (640,128) bf16 slab."""
    slab = jnp.zeros((SLAB_ROWS, LANES), jnp.float32)

    # Toeplitz / im2col matrix for Conv1d(1->C, k=K, stride=1)+ReLU, flattened
    # channel-major exactly like torch's .flatten of (B, C, L_out).
    wt = jnp.zeros((NUM_SCAN_SAMPLES, CONV_OUT_SIZE), jnp.float32)
    t = jnp.arange(CONV_LOUT)
    for c in range(CONV_CHANNELS):
        for k in range(CONV_KERNEL):
            wt = wt.at[t + k, c * CONV_LOUT + t].set(params["conv_w"][c, k])
    slab = slab.at[R_WTOEP:R_WTOEP + NUM_SCAN_SAMPLES, :CONV_OUT_SIZE].set(wt)
    # conv bias folded into the ones-lane row.
    slab = slab.at[R_WTOEP + ONES_LANE, :CONV_OUT_SIZE].set(
        jnp.repeat(params["conv_b"], CONV_LOUT))

    # Fused h weights.  Top 128 rows see the conv features, bottom 128 rows see
    # the packed input block [states | actions | 1 | pad].
    slab = slab.at[R_WH:R_WH + CONV_OUT_SIZE, :HALF_HIDDEN].set(
        params["fc1_w"][:CONV_OUT_SIZE, :])
    slab = slab.at[R_WH + LANES + NUM_SCAN_SAMPLES:
                   R_WH + LANES + STATE_SIZE, :HALF_HIDDEN].set(
        params["fc1_w"][CONV_OUT_SIZE:, :])
    slab = slab.at[R_WH + LANES + STATE_SIZE:
                   R_WH + LANES + STATE_SIZE + ACTION_SIZE,
                   HALF_HIDDEN:HIDDEN_SIZE].set(params["fa1_w"])
    # [fc1_b | fa1_b] folded into the ones-lane row; also start the constant-1
    # column that carries the downstream biases (relu(1) == 1).
    slab = slab.at[R_WH + LANES + ONES_LANE, :HALF_HIDDEN].set(params["fc1_b"][0])
    slab = slab.at[R_WH + LANES + ONES_LANE,
                   HALF_HIDDEN:HIDDEN_SIZE].set(params["fa1_b"][0])
    slab = slab.at[R_WH + LANES + ONES_LANE, ONES_COL].set(1.0)

    # fca1 with bias folded into the ones column (and propagate the 1).
    slab = slab.at[R_W2:R_W2 + HIDDEN_SIZE, :HIDDEN_SIZE].set(params["fca1_w"])
    slab = slab.at[R_W2 + ONES_COL, :HIDDEN_SIZE].set(params["fca1_b"][0])
    slab = slab.at[R_W2 + ONES_COL, ONES_COL].set(1.0)

    # fca2 with bias folded into the ones column.
    slab = slab.at[R_W3:R_W3 + HIDDEN_SIZE, :1].set(params["fca2_w"])
    slab = slab.at[R_W3 + ONES_COL, 0].set(params["fca2_b"][0, 0])

    return slab.astype(jnp.bfloat16)


# ------------------------------- forward wrapper ------------------------------
def _round_up(x, m):
    return ((x + m - 1) // m) * m


@jax.jit
def critic_forward(states, actions, slab):
    b = states.shape[0]
    b_pad16 = _round_up(max(b, 1), 16)            # 16-row tiles (bf16 sublane pack)
    if b_pad16 <= 16:
        block_b = b_pad16
    else:
        # >=2 blocks so the "parallel" grid axis can engage the 2nd TensorCore
        # on v7x; blocks up to 512 rows amortize the ~0.35us per-step overhead.
        block_b = min(512, _round_up(b_pad16 // 2, 16))
    b_pad = _round_up(b_pad16, block_b)

    # One lane-dense bf16 input block: [states | actions | 1 | zero pad].
    ones = jnp.ones((b, 1), jnp.float32)
    packed = jnp.concatenate([states, actions, ones], axis=1)      # (b, 39)
    inp = jnp.pad(packed, ((0, b_pad - b), (0, LANES - packed.shape[1]))
                  ).astype(jnp.bfloat16)

    out = pl.pallas_call(
        critic_kernel,
        out_shape=jax.ShapeDtypeStruct((b_pad, LANES), jnp.bfloat16),
        grid=(b_pad // block_b,),
        in_specs=[
            pl.BlockSpec((block_b, LANES), lambda i: (i, 0)),
            # constant index_map -> single resident copy of the slab across
            # grid steps (pl.Buffered(1) would state this explicitly).
            pl.BlockSpec((SLAB_ROWS, LANES), lambda i: (0, 0)),
        ],
        out_specs=pl.BlockSpec((block_b, LANES), lambda i: (i, 0)),
        compiler_params=pltpu.CompilerParams(
            dimension_semantics=("parallel",)),     # shards across TCs on v7x
    )(inp, slab)
    return out[:b, :1].astype(jnp.float32)          # Q-value lives in column 0


# --------------------------- pure-JAX reference -------------------------------
def critic_reference(states, actions, params):
    laser = states[:, :NUM_SCAN_SAMPLES]
    other = states[:, NUM_SCAN_SAMPLES:NUM_SCAN_SAMPLES + 4]
    chans = []
    for c in range(CONV_CHANNELS):
        acc = jnp.zeros((states.shape[0], CONV_LOUT), jnp.float32)
        for k in range(CONV_KERNEL):
            acc = acc + params["conv_w"][c, k] * laser[:, k:k + CONV_LOUT]
        chans.append(jax.nn.relu(acc + params["conv_b"][c]))
    conv_states = jnp.concatenate(chans, axis=1)
    feat = jnp.concatenate([conv_states, other], axis=1)
    xs = jax.nn.relu(feat @ params["fc1_w"] + params["fc1_b"])
    xa = jax.nn.relu(actions @ params["fa1_w"] + params["fa1_b"])
    x = jnp.concatenate([xs, xa], axis=1)
    x = jax.nn.relu(x @ params["fca1_w"] + params["fca1_b"])
    return x @ params["fca2_w"] + params["fca2_b"]


# --------------------------- deterministic init --------------------------------
def xavier_uniform(key, out_dim, in_dim):
    bound = (6.0 / (in_dim + out_dim)) ** 0.5
    # PyTorch stores Linear weight as (out, in); we transpose to (in, out).
    w = jax.random.uniform(key, (out_dim, in_dim), jnp.float32, -bound, bound)
    return w.T


def make_params(key):
    ks = jax.random.split(key, 6)
    bias = lambda n: jnp.full((1, n), 0.01, jnp.float32)
    return {
        # conv_function params (external module in the original code)
        "conv_w": jax.random.uniform(ks[0], (CONV_CHANNELS, CONV_KERNEL),
                                     jnp.float32, -0.3, 0.3),
        "conv_b": jnp.full((CONV_CHANNELS,), 0.01, jnp.float32),
        # fc1 / fa1 / fca1 / fca2, xavier-uniform weights, bias = 0.01
        "fc1_w": xavier_uniform(ks[1], HALF_HIDDEN, FC1_IN),
        "fc1_b": bias(HALF_HIDDEN),
        "fa1_w": xavier_uniform(ks[2], HALF_HIDDEN, ACTION_SIZE),
        "fa1_b": bias(HALF_HIDDEN),
        "fca1_w": xavier_uniform(ks[3], HIDDEN_SIZE, HIDDEN_SIZE),
        "fca1_b": bias(HIDDEN_SIZE),
        "fca2_w": xavier_uniform(ks[4], 1, HIDDEN_SIZE),
        "fca2_b": bias(1),
    }


if __name__ == "__main__":
    key = jax.random.PRNGKey(0)
    k_p, k_s, k_a = jax.random.split(key, 3)
    params = make_params(k_p)
    states = jax.random.uniform(k_s, (BATCH, STATE_SIZE), jnp.float32, 0.0, 1.0)
    actions = jax.random.uniform(k_a, (BATCH, ACTION_SIZE), jnp.float32, -1.0, 1.0)

    slab = jax.block_until_ready(pack_slab(params))   # pack parameters once

    out = critic_forward(states, actions, slab)
    out = jax.block_until_ready(out)

    ref = critic_reference(states, actions, params)
    assert out.shape == (BATCH, 1)
    # bf16 operands with f32 accumulation across 4 chained matmuls.
    assert jnp.allclose(out, ref, rtol=2e-2, atol=2e-2), (out, ref)

    print("KERNEL_OK")
</pallas_src>

<mosaic_0001>
module attributes {stable_mosaic.version = 11 : i64} {
  func.func @critic_kernel(%arg0: i32, %arg1: memref<16x128xbf16, #tpu.memory_space<vmem>>, %arg2: memref<640x128xbf16, #tpu.memory_space<vmem>>, %arg3: memref<16x128xbf16, #tpu.memory_space<vmem>>) attributes {dimension_semantics = [#tpu.dimension_semantics<parallel>], iteration_bounds = array<i64: 1>, scalar_prefetch = 0 : i64, scratch_operands = 0 : i64, tpu.core_type = #tpu.core_type<tc>, window_params = [{transform_indices = @transform_0, window_bounds = array<i64: 16, 128>}, {pipeline_mode = #tpu.pipeline_mode<synchronous>, transform_indices = @transform_1, window_bounds = array<i64: 640, 128>}, {transform_indices = @transform_2, window_bounds = array<i64: 16, 128>}]} {
    %c0 = arith.constant 0 : index
    %c0_0 = arith.constant 0 : index
    %0 = vector.load %arg2[%c0, %c0_0] : memref<640x128xbf16, #tpu.memory_space<vmem>>, vector<128x128xbf16>
    %c128 = arith.constant 128 : index
    %c0_1 = arith.constant 0 : index
    %1 = vector.load %arg2[%c128, %c0_1] : memref<640x128xbf16, #tpu.memory_space<vmem>>, vector<256x128xbf16>
    %c384 = arith.constant 384 : index
    %c0_2 = arith.constant 0 : index
    %2 = vector.load %arg2[%c384, %c0_2] : memref<640x128xbf16, #tpu.memory_space<vmem>>, vector<128x128xbf16>
    %c512 = arith.constant 512 : index
    %c0_3 = arith.constant 0 : index
    %3 = vector.load %arg2[%c512, %c0_3] : memref<640x128xbf16, #tpu.memory_space<vmem>>, vector<128x128xbf16>
    %c0_4 = arith.constant 0 : index
    %c0_5 = arith.constant 0 : index
    %4 = vector.load %arg1[%c0_4, %c0_5] : memref<16x128xbf16, #tpu.memory_space<vmem>>, vector<16x128xbf16>
    %cst = arith.constant dense<0.000000e+00> : vector<16x128xf32>
    %5 = tpu.matmul %4, %0, %cst {dimension_numbers = #tpu.dot_dimension_numbers<[1], [0], [0], [1], [0, 0, 1, 1], [], []>} : vector<16x128xbf16>, vector<128x128xbf16>, vector<16x128xf32> -> vector<16x128xf32>
    %cst_6 = arith.constant 0.000000e+00 : f32
    %6 = vector.broadcast %cst_6 : f32 to vector<16x128xf32>
    %7 = arith.maximumf %5, %6 : vector<16x128xf32>
    %8 = arith.truncf %7 : vector<16x128xf32> to vector<16x128xbf16>
    %c0_7 = arith.constant 0 : index
    %c0_8 = arith.constant 0 : index
    %9 = vector.load %arg1[%c0_7, %c0_8] : memref<16x128xbf16, #tpu.memory_space<vmem>>, vector<16x128xbf16>
    %10 = tpu.concatenate %8, %9 in 1 : vector<16x128xbf16>, vector<16x128xbf16> -> vector<16x256xbf16>
    %cst_9 = arith.constant dense<0.000000e+00> : vector<16x128xf32>
    %11 = tpu.matmul %10, %1, %cst_9 {dimension_numbers = #tpu.dot_dimension_numbers<[1], [0], [0], [1], [0, 0, 1, 1], [], []>} : vector<16x256xbf16>, vector<256x128xbf16>, vector<16x128xf32> -> vector<16x128xf32>
    %cst_10 = arith.constant 0.000000e+00 : f32
    %12 = vector.broadcast %cst_10 : f32 to vector<16x128xf32>
    %13 = arith.maximumf %11, %12 : vector<16x128xf32>
    %14 = arith.truncf %13 : vector<16x128xf32> to vector<16x128xbf16>
    %cst_11 = arith.constant dense<0.000000e+00> : vector<16x128xf32>
    %15 = tpu.matmul %14, %2, %cst_11 {dimension_numbers = #tpu.dot_dimension_numbers<[1], [0], [0], [1], [0, 0, 1, 1], [], []>} : vector<16x128xbf16>, vector<128x128xbf16>, vector<16x128xf32> -> vector<16x128xf32>
    %cst_12 = arith.constant 0.000000e+00 : f32
    %16 = vector.broadcast %cst_12 : f32 to vector<16x128xf32>
    %17 = arith.maximumf %15, %16 : vector<16x128xf32>
    %18 = arith.truncf %17 : vector<16x128xf32> to vector<16x128xbf16>
    %cst_13 = arith.constant dense<0.000000e+00> : vector<16x128xf32>
    %19 = tpu.matmul %18, %3, %cst_13 {dimension_numbers = #tpu.dot_dimension_numbers<[1], [0], [0], [1], [0, 0, 1, 1], [], []>} : vector<16x128xbf16>, vector<128x128xbf16>, vector<16x128xf32> -> vector<16x128xf32>
    %20 = arith.truncf %19 : vector<16x128xf32> to vector<16x128xbf16>
    %c0_14 = arith.constant 0 : index
    %c0_15 = arith.constant 0 : index
    %21 = vector.load %arg3[%c0_14, %c0_15] : memref<16x128xbf16, #tpu.memory_space<vmem>>, vector<16x128xbf16>
    tpu.vector_store %arg3[%c0_14, %c0_15], %20 {strides = array<i32>} : memref<16x128xbf16, #tpu.memory_space<vmem>>, vector<16x128xbf16>,
    return
  }
  func.func @transform_0(%arg0: i32) -> (i32, i32) {
    %c0_i32 = arith.constant 0 : i32
    %c0_i32_0 = arith.constant 0 : i32
    return %arg0, %c0_i32 : i32, i32
  }
  func.func @transform_1(%arg0: i32) -> (i32, i32) {
    %c0_i32 = arith.constant 0 : i32
    %c0_i32_0 = arith.constant 0 : i32
    %c0_i32_1 = arith.constant 0 : i32
    return %c0_i32, %c0_i32_0 : i32, i32
  }
  func.func @transform_2(%arg0: i32) -> (i32, i32) {
    %c0_i32 = arith.constant 0 : i32
    %c0_i32_0 = arith.constant 0 : i32
    return %arg0, %c0_i32 : i32, i32
  }
}

</mosaic_0001>

<bundles_post_ra>
// kernel: critic_forward.1
= control target key start
LH: loop header
LB: loop body
LE: loop exit
PB: predicated region body
PF: predicated region fallthrough
CT: control target
= control target key end

     0   :  { %7 = vsyncpa [#allocation3], 0  ;;  %s771_s9 = smov [#allocation2]   ;;  %s839_s0 = inlined_call_operand.vmem [shape: bf16[16,128], index: 0, kind: input, shape index: {}]   ;;  %s840_s1 = inlined_call_operand.hbm [shape: bf16[640,128], index: 1, kind: input, shape index: {}]   ;;  %s841_s2 = inlined_call_operand.vmem [shape: bf16[16,128], index: 2, kind: output, shape index: {}]  }
   0x1   :  { %s15_s10 = sshll.u32 %s771_s9, 4  ;;  %s747_s13 = scalar_lea.hbm %s840_s1, 5120  ;;  %s16_s10 = int_to_ptr.vmem [resolvable:$true] %s15_s10 }
   0x2   :  { %p748_p0 = scmp.ne.s32.totalorder %s840_s1, %s747_s13  ;;  %p751_p1 = scmp.lt.u32.totalorder %s747_s13, %s840_s1 }
   0x4   :  { %p753_p2 = pnand %p751_p1, %p748_p0 }
   0x6   :  { %756 = shalt.err (!%p753_p2)
}
   0x7   :  { %s757_s18 = scalar_lea.vmem %s16_s10, 5120  ;;  %p762_p4 = scmp.lt.s32.totalorder %s16_s10, %s16_s10 }
   0x8   :  { %p758_p3 = scmp.ne.s32.totalorder %s16_s10, %s757_s18  ;;  %p763_p5 = scmp.lt.s32.totalorder %s757_s18, %s757_s18 }
   0xa   :  { %p764_p6 = por %p763_p5, %p762_p4 }
   0xc   :  { %p765_p7 = pnand %p764_p6, %p758_p3 }
   0xe   :  { %768 = shalt.err (!%p765_p7)
}
   0xf   :  { %s772_s19 = smov 64   ;;  %s773_s20 = smov 4  }
  0x10   :  { %21 = dma.hbm_to_vmem [thread:$0]  %s840_s1, 5120, %s16_s10, [#allocation3], %s772_s19, %s772_s19, %s773_s20  }
  0x11   :  { %769 = dma.done.wait [#allocation3], 5120  }
  0x12   :  { %770 = vsyncadd [#allocation3], 4294962176  ;;  %v774_v0 = vmov 0.0   ;;  %vm775_vm0 = vmmov 0   ;;  %v706_v1 = vld [vmem:[#allocation2] sm:$0xff]   ;;  %v707_v2 = vld [vmem:[#allocation2 + $0x8] sm:$0xff]  }
  0x13   :  { %641 = vmatprep.subr.bf16.mxu0 %v774_v0  ;;  %657 = vmatprep.mubr.msk.bf16.mxu0 %vm775_vm0, %v774_v0  ;;  %v708_v3 = vld [vmem:[#allocation2 + $0x10] sm:$0xff]   ;;  %v709_v4 = vld [vmem:[#allocation2 + $0x18] sm:$0xff]   ;;  %v714_v5 = vld [vmem:[%s839_s0] sm:$0xff]  }
  0x14   :  { %642 = vmatpush3.bf16.msra.mxu0 %v706_v1  ;;  %v715_v6 = vld [vmem:[#allocation2 + $0x80] sm:$0xff]   ;;  %334 = vmatprep.mubr.bf16.mxu1 %v714_v5  ;;  %v717_v8 = vld [vmem:[#allocation2 + $0x88] sm:$0xff]   ;;  %v719_v10 = vld [vmem:[#allocation2 + $0x90] sm:$0xff]  }
  0x15   :  { %643 = vmatprep.subr.bf16.mxu0 %v774_v0  ;;  %v716_v7 = vld [vmem:[#allocation2 + $0x40] sm:$0xff]   ;;  %601 = vmatprep.subr.bf16.mxu1 %v715_v6  ;;  %v718_v9 = vld [vmem:[#allocation2 + $0x48] sm:$0xff]   ;;  %v720_v12 = vld [vmem:[#allocation2 + $0x50] sm:$0xff]  }
  0x16   :  { %602 = vmatpush3.bf16.msra.mxu1 %v716_v7  ;;  %v710_v11 = vld [vmem:[#allocation2 + $0x20] sm:$0xff]   ;;  %v721_v13 = vld [vmem:[#allocation2 + $0x98] sm:$0xff]   ;;  %v711_v14 = vld [vmem:[#allocation2 + $0x28] sm:$0xff]  }
  0x17   :  { %603 = vmatprep.subr.bf16.mxu1 %v717_v8  ;;  %v712_v15 = vld [vmem:[#allocation2 + $0x30] sm:$0xff]   ;;  %v722_v16 = vld [vmem:[#allocation2 + $0x58] sm:$0xff]   ;;  %v723_v17 = vld [vmem:[#allocation2 + $0xa0] sm:$0xff]  }
  0x18   :  { %644 = vmatpush3.bf16.msra.mxu0 %v707_v2  ;;  %v724_v18 = vld [vmem:[#allocation2 + $0x60] sm:$0xff]   ;;  %v725_v19 = vld [vmem:[#allocation2 + $0xa8] sm:$0xff]   ;;  %v713_v20 = vld [vmem:[#allocation2 + $0x38] sm:$0xff]  }
  0x19   :  { %645 = vmatprep.subr.bf16.mxu0 %v774_v0  ;;  %v726_v21 = vld [vmem:[#allocation2 + $0x68] sm:$0xff]   ;;  %v727_v22 = vld [vmem:[#allocation2 + $0xb0] sm:$0xff]   ;;  %v729_v24 = vld [vmem:[#allocation2 + $0xb8] sm:$0xff]  }
  0x1a   :  { %604 = vmatpush3.bf16.msra.mxu1 %v718_v9  ;;  %v728_v23 = vld [vmem:[#allocation2 + $0x70] sm:$0xff]   ;;  %v730_v25 = vld [vmem:[#allocation2 + $0x78] sm:$0xff]   ;;  %v731_v26 = vld [vmem:[#allocation2 + $0xc0] sm:$0xff]  }
  0x1b   :  { %605 = vmatprep.subr.bf16.mxu1 %v719_v10  ;;  %v732_v27 = vld [vmem:[#allocation2 + $0xc8] sm:$0xff]   ;;  %v733_v28 = vld [vmem:[#allocation2 + $0xd0] sm:$0xff]   ;;  %v734_v29 = vld [vmem:[#allocation2 + $0xd8] sm:$0xff]  }
  0x1c   :  { %646 = vmatpush3.bf16.msra.mxu0 %v708_v3  ;;  %v735_v30 = vld [vmem:[#allocation2 + $0xe0] sm:$0xff]   ;;  %v736_v31 = vld [vmem:[#allocation2 + $0xe8] sm:$0xff]   ;;  %v737_v39 = vld [vmem:[#allocation2 + $0xf0] sm:$0xff]  }
  0x1d   :  { %647 = vmatprep.subr.bf16.mxu0 %v774_v0  ;;  %v738_v40 = vld [vmem:[#allocation2 + $0xf8] sm:$0xff]   ;;  %v739_v41 = vld [vmem:[#allocation2 + $0x100] sm:$0xff]   ;;  %v740_v42 = vld [vmem:[#allocation2 + $0x108] sm:$0xff]  }
  0x1e   :  { %606 = vmatpush3.bf16.msra.mxu1 %v720_v12  ;;  %v741_v43 = vld [vmem:[#allocation2 + $0x110] sm:$0xff]   ;;  %v742_v44 = vld [vmem:[#allocation2 + $0x118] sm:$0xff]   ;;  %v743_v45 = vld [vmem:[#allocation2 + $0x120] sm:$0xff]  }
  0x1f   :  { %607 = vmatprep.subr.bf16.mxu1 %v721_v13  ;;  %v744_v46 = vld [vmem:[#allocation2 + $0x128] sm:$0xff]   ;;  %v745_v56 = vld [vmem:[#allocation2 + $0x130] sm:$0xff]   ;;  %v746_v57 = vld [vmem:[#allocation2 + $0x138] sm:$0xff]  }
  0x20   :  { %648 = vmatpush3.bf16.msra.mxu0 %v709_v4 }
  0x21   :  { %649 = vmatprep.subr.bf16.mxu0 %v774_v0 }
  0x22   :  { %608 = vmatpush3.bf16.msra.mxu1 %v722_v16 }
  0x23   :  { %609 = vmatprep.subr.bf16.mxu1 %v723_v17 }
  0x24   :  { %650 = vmatpush3.bf16.msra.mxu0 %v710_v11 }
  0x25   :  { %651 = vmatprep.subr.bf16.mxu0 %v774_v0 }
  0x26   :  { %610 = vmatpush3.bf16.msra.mxu1 %v724_v18 }
  0x27   :  { %611 = vmatprep.subr.bf16.mxu1 %v725_v19 }
  0x28   :  { %652 = vmatpush3.bf16.msra.mxu0 %v711_v14 }
  0x29   :  { %653 = vmatprep.subr.bf16.mxu0 %v774_v0 }
  0x2a   :  { %612 = vmatpush3.bf16.msra.mxu1 %v726_v21 }
  0x2b   :  { %613 = vmatprep.subr.bf16.mxu1 %v727_v22 }
  0x2c   :  { %654 = vmatpush3.bf16.msra.mxu0 %v712_v15 }
  0x2d   :  { %655 = vmatprep.subr.bf16.mxu0 %v774_v0 }
  0x2e   :  { %614 = vmatpush3.bf16.msra.mxu1 %v728_v23 }
  0x2f   :  { %615 = vmatprep.subr.bf16.mxu1 %v729_v24 }
  0x30   :  { %656 = vmatpush3.bf16.msra.mxu0 %v713_v20 }
  0x31   :  { %661 = vmatprep.subr.bf16.mxu0 %v774_v0 }
  0x32   :  { %616 = vmatpush3.bf16.msra.mxu1 %v730_v25 }
  0x33   :  { %658 = vmatmul.mubr.bf16.vlgmr.msra.gmra.mrb[0].mxu0 %v714_v5  ;;  %681 = vmatprep.subr.bf16.mxu1 %v774_v0 }
  0x34   :  { %677 = vmatprep.mubr.msk.bf16.mxu0 %vm775_vm0, %v774_v0  ;;  %662 = vmatpush3.bf16.msra.mxu0 %v731_v26 }
  0x35   :  { %663 = vmatprep.subr.bf16.mxu0 %v774_v0 }
  0x38   :  { %664 = vmatpush3.bf16.msra.mxu0 %v732_v27 }
  0x39   :  { %665 = vmatprep.subr.bf16.mxu0 %v774_v0 }
  0x3c   :  { %666 = vmatpush3.bf16.msra.mxu0 %v733_v28 }
  0x3d   :  { %667 = vmatprep.subr.bf16.mxu0 %v774_v0 }
  0x40   :  { %668 = vmatpush3.bf16.msra.mxu0 %v734_v29 }
  0x41   :  { %669 = vmatprep.subr.bf16.mxu0 %v774_v0 }
  0x44   :  { %670 = vmatpush3.bf16.msra.mxu0 %v735_v30 }
  0x45   :  { %671 = vmatprep.subr.bf16.mxu0 %v774_v0 }
  0x48   :  { %672 = vmatpush3.bf16.msra.mxu0 %v736_v31 }
  0x49   :  { %673 = vmatprep.subr.bf16.mxu0 %v774_v0 }
  0x4c   :  { %674 = vmatpush3.bf16.msra.mxu0 %v737_v39 }
  0x4d   :  { %675 = vmatprep.subr.bf16.mxu0 %v774_v0 }
  0x50   :  { %676 = vmatpush3.bf16.msra.mxu0 %v738_v40 }
 0x106   :  { %v196_v32 = vpop.f32.mrb[0].mxu0 }
 0x107   :  { %v659_v33 = vpop.f32.mrb[1].mxu0  ;;  %v203_v35 = vmax.f32 %v196_v32, 0.0 }
 0x108   :  { %v199_v34 = vpop.f32.mrb[2].mxu0 }
 0x109   :  { %v204_v36 = vmax.f32 %v199_v34, 0.0  ;;  %v660_v37 = vpop.f32.mrb[3].mxu0 }
 0x10b   :  { %v205_v38 = vpack.c.bf16 %v204_v36, %v203_v35 }
 0x10d   :  { %335 = vmatmul.mubr.bf16.vlgmr.msra.gmra.mrb[0].mxu1 %v205_v38 }
 0x10e   :  { %697 = vmatprep.mubr.msk.bf16.mxu1 %vm775_vm0, %v774_v0  ;;  %682 = vmatpush3.bf16.msra.mxu1 %v739_v41 }
 0x10f   :  { %683 = vmatprep.subr.bf16.mxu1 %v774_v0 }
 0x112   :  { %684 = vmatpush3.bf16.msra.mxu1 %v740_v42 }
 0x113   :  { %685 = vmatprep.subr.bf16.mxu1 %v774_v0 }
 0x116   :  { %686 = vmatpush3.bf16.msra.mxu1 %v741_v43 }
 0x117   :  { %687 = vmatprep.subr.bf16.mxu1 %v774_v0 }
 0x11a   :  { %688 = vmatpush3.bf16.msra.mxu1 %v742_v44 }
 0x11b   :  { %689 = vmatprep.subr.bf16.mxu1 %v774_v0 }
 0x11e   :  { %690 = vmatpush3.bf16.msra.mxu1 %v743_v45 }
 0x11f   :  { %691 = vmatprep.subr.bf16.mxu1 %v774_v0 }
 0x122   :  { %692 = vmatpush3.bf16.msra.mxu1 %v744_v46 }
 0x123   :  { %693 = vmatprep.subr.bf16.mxu1 %v774_v0 }
 0x126   :  { %694 = vmatpush3.bf16.msra.mxu1 %v745_v56 }
 0x127   :  { %695 = vmatprep.subr.bf16.mxu1 %v774_v0 }
 0x12a   :  { %696 = vmatpush3.bf16.msra.mxu1 %v746_v57 }
 0x1e0   :  { %v617_v47 = vpop.f32.mrb[0].mxu1 }
 0x1e1   :  { %v618_v48 = vpop.f32.mrb[1].mxu1 }
 0x1e2   :  { %v619_v49 = vadd.f32 %v618_v48, %v617_v47  ;;  %v620_v50 = vpop.f32.mrb[2].mxu1 }
 0x1e3   :  { %v621_v51 = vpop.f32.mrb[3].mxu1 }
 0x1e4   :  { %v622_v52 = vadd.f32 %v621_v51, %v620_v50  ;;  %v343_v53 = vmax.f32 %v619_v49, 0.0 }
 0x1e6   :  { %v344_v54 = vmax.f32 %v622_v52, 0.0 }
 0x1e8   :  { %v345_v55 = vpack.c.bf16 %v344_v54, %v343_v53 }
 0x1ea   :  { %678 = vmatmul.mubr.bf16.vlgmr.msra.gmra.mrb[4].mxu0 %v345_v55 }
 0x2bd   :  { %v428_v58 = vpop.f32.mrb[4].mxu0 }
 0x2be   :  { %v679_v59 = vpop.f32.mrb[5].mxu0  ;;  %v435_v61 = vmax.f32 %v428_v58, 0.0 }
 0x2bf   :  { %v431_v60 = vpop.f32.mrb[6].mxu0 }
 0x2c0   :  { %v436_v62 = vmax.f32 %v431_v60, 0.0  ;;  %v680_v63 = vpop.f32.mrb[7].mxu0 }
 0x2c2   :  { %v437_v1 = vpack.c.bf16 %v436_v62, %v435_v61 }
 0x2c4   :  { %698 = vmatmul.mubr.bf16.vlgmr.msra.gmra.mrb[4].mxu1 %v437_v1 }
 0x397   :  { %v520_v2 = vpop.f32.mrb[4].mxu1 }
 0x398   :  { %v699_v3 = vpop.f32.mrb[5].mxu1 }
 0x399   :  { %v523_v4 = vpop.f32.mrb[6].mxu1 }
 0x39a   :  { %v590_v5 = vpack.c.bf16 %v523_v4, %v520_v2  ;;  %v700_v6 = vpop.f32.mrb[7].mxu1 }
 0x39c   :  { %591 = vst [vmem:[%s841_s2] sm:$0xff] %v590_v5  }
 0x39d   :  { %541 = vsyncpa [#allocation3], 1 }

</bundles_post_ra>
